<compile_context>
chip_gen: v7x
topology: tpu7x:2x2x1
jax: 0.10.0
libtpu: 0.0.40
codegen_flags: <defaults>
</compile_context>

<pallas_src>
import jax
import jax.numpy as jnp
from jax.experimental import pallas as pl
from jax.experimental.pallas import tpu as pltpu

C_IN, C_MID, C_OUT, N_CLS, KS = 21, 64, 128, 2, 3
K1_PAD = 64  # conv1 im2col K (3*21=63) padded to a clean 64 lanes


def cnn_kernel(x_ref, w1_ref, b1_ref, w2_ref, b2_ref, pooled_ref):
    TB, L, _ = x_ref.shape
    M = TB * L

    # Per-sequence first/last-row masks (conv padding=1 boundaries).
    pos = jax.lax.broadcasted_iota(jnp.int32, (TB, L, 1), 1).reshape(M, 1)
    first = pos == 0
    last = pos == (L - 1)

    def im2col3(v, pad_to=None):
        # v: (M, C) f32. Length shifts via XLU sublane rolls + boundary masks
        # (no zero-row concat copies through the vector store slot).
        prev = jnp.where(first, 0.0, pltpu.roll(v, 1, axis=0))       # x[l-1]
        nxt = jnp.where(last, 0.0, pltpu.roll(v, M - 1, axis=0))     # x[l+1]
        parts = [prev, v, nxt]
        if pad_to is not None and pad_to > 3 * v.shape[1]:
            parts.append(jnp.zeros((M, pad_to - 3 * v.shape[1]), v.dtype))
        return jnp.concatenate(parts, axis=1)

    # ---- conv1 (k=3, pad=1): one im2col matmul, bf16 operands, f32 acc ----
    x = x_ref[...].astype(jnp.float32).reshape(M, C_IN)
    cols1 = im2col3(x, pad_to=K1_PAD).astype(jnp.bfloat16)            # (M, 64)
    a1 = jax.lax.dot_general(cols1, w1_ref[...],
                             (((1,), (0,)), ((), ())),
                             preferred_element_type=jnp.float32)
    h1 = jnp.maximum(a1 + b1_ref[...], 0.0)                           # (M, 64) f32

    # ---- conv2 (k=3, pad=1): one im2col matmul ----
    cols2 = im2col3(h1).astype(jnp.bfloat16)                          # (M, 192)
    a2 = jax.lax.dot_general(cols2, w2_ref[...],
                             (((1,), (0,)), ((), ())),
                             preferred_element_type=jnp.float32)
    h2 = jnp.maximum(a2 + b2_ref[...], 0.0)                           # (M, 128) f32

    # ---- AdaptiveMaxPool1d(1): lane-dense (TB, 128) output ----
    pooled_ref[...] = jnp.max(h2.reshape(TB, L, C_OUT), axis=1).astype(
        pooled_ref.dtype)


def _pick_batch_tile(B, L, batch_tile):
    if batch_tile is None:
        # Target ~1024 im2col rows per step (feeds the 256x256 MXU on v6e/v7x,
        # >=512 on v5e); live intermediates stay ~<3 MB, well under the scoped
        # VMEM defaults on every generation (v5e 16 MiB, v6e/v7x 32 MiB).
        batch_tile = max(1, min(1024 // max(L, 1), 512))
    tb = min(batch_tile, B)
    if tb < B:
        tb = max(8, (tb // 8) * 8)       # sublane-aligned output block
    # v7x megacore: give large problems >= 2 grid steps so the "parallel"
    # batch axis can split across the 2 TensorCores.
    if tb == B and B >= 16 and B * L >= 2048:
        tb = ((B + 1) // 2 + 7) // 8 * 8
    return tb


def cnn_forward(x, params, *, batch_tile=None):
    """x: (B, L, 21) float32 -> (B, 2) float32 logits."""
    w1, b1, w2, b2, wf, bf = params
    B, L, _ = x.shape
    TB = _pick_batch_tile(B, L, batch_tile)
    n_steps = pl.cdiv(B, TB)
    Bp = n_steps * TB

    # One-time host-side prep: bf16 input (halves the only large HBM operand),
    # im2col weight layout (conv1 K padded 63 -> 64), f32 biases.
    xb = x.astype(jnp.bfloat16)
    if Bp != B:
        xb = jnp.concatenate(
            [xb, jnp.zeros((Bp - B, L, C_IN), xb.dtype)], axis=0)
    w1f = jnp.pad(w1.reshape(KS * C_IN, C_MID),
                  ((0, K1_PAD - KS * C_IN), (0, 0))).astype(jnp.bfloat16)
    w2f = w2.reshape(KS * C_MID, C_OUT).astype(jnp.bfloat16)          # (192, 128)
    b1f = b1.reshape(1, C_MID).astype(jnp.float32)
    b2f = b2.reshape(1, C_OUT).astype(jnp.float32)

    const = lambda s: pl.BlockSpec(s, lambda b: (0,) * len(s))

    pooled = pl.pallas_call(
        cnn_kernel,
        out_shape=jax.ShapeDtypeStruct((Bp, C_OUT), jnp.float32),
        grid=(n_steps,),
        in_specs=[
            pl.BlockSpec((TB, L, C_IN), lambda b: (b, 0, 0)),
            const(w1f.shape), const(b1f.shape),
            const(w2f.shape), const(b2f.shape),
        ],
        out_specs=pl.BlockSpec((TB, C_OUT), lambda b: (b, 0)),
        compiler_params=pltpu.CompilerParams(
            dimension_semantics=("parallel",)),
    )(xb, w1f, b1f, w2f, b2f)

    # Final Linear(128 -> 2) in the wrapper: keeps the kernel's output block
    # lane-dense (unmasked vst); the (B,128)@(128,2) is trivial for XLA.
    return (pooled[:B].astype(jnp.float32) @ wf.astype(jnp.float32)
            + bf.astype(jnp.float32))


def init_params(key):
    """Deterministic init mimicking PyTorch's uniform(-1/sqrt(fan_in), ...)."""
    ks = jax.random.split(key, 6)

    def uinit(k, shape, fan_in):
        bound = 1.0 / (fan_in ** 0.5)
        return jax.random.uniform(k, shape, jnp.float32, -bound, bound)

    w1 = uinit(ks[0], (KS, C_IN, C_MID), C_IN * KS)      # (3, 21, 64)  (W, I, O)
    b1 = uinit(ks[1], (1, 1, C_MID), C_IN * KS)
    w2 = uinit(ks[2], (KS, C_MID, C_OUT), C_MID * KS)    # (3, 64, 128)
    b2 = uinit(ks[3], (1, 1, C_OUT), C_MID * KS)
    wf = uinit(ks[4], (C_OUT, N_CLS), C_OUT)             # (128, 2)
    bf = uinit(ks[5], (1, N_CLS), C_OUT)
    return (w1, b1, w2, b2, wf, bf)


def ref_forward(x, params):
    """Pure-JAX f32 reference (matches the PyTorch forward semantics)."""
    w1, b1, w2, b2, wf, bf = params
    dn = ('NWC', 'WIO', 'NWC')
    h1 = jax.nn.relu(jax.lax.conv_general_dilated(
        x, w1, (1,), 'SAME', dimension_numbers=dn) + b1.reshape(1, 1, -1))
    h2 = jax.nn.relu(jax.lax.conv_general_dilated(
        h1, w2, (1,), 'SAME', dimension_numbers=dn) + b2.reshape(1, 1, -1))
    pooled = jnp.max(h2, axis=1)
    return pooled @ wf + bf


if __name__ == "__main__":
    key = jax.random.PRNGKey(0)
    pkey, xkey = jax.random.split(key)
    params = init_params(pkey)

    B, L = 2, 16
    x = jax.random.normal(xkey, (B, L, C_IN), dtype=jnp.float32)

    out = jax.block_until_ready(cnn_forward(x, params))
    ref = jax.block_until_ready(ref_forward(x, params))

    assert out.shape == (B, N_CLS)
    # bf16 MXU operands with f32 accumulation vs the pure-f32 reference
    # (intentional; documented tolerance).
    assert jnp.allclose(out, ref, rtol=2e-2, atol=2e-2), (out, ref)

    print("KERNEL_OK")
</pallas_src>

<mosaic_0001>
module attributes {stable_mosaic.version = 11 : i64} {
  func.func @cnn_kernel(%arg0: i32, %arg1: memref<2x16x21xbf16, #tpu.memory_space<vmem>>, %arg2: memref<64x64xbf16, #tpu.memory_space<vmem>>, %arg3: memref<1x64xf32, #tpu.memory_space<vmem>>, %arg4: memref<192x128xbf16, #tpu.memory_space<vmem>>, %arg5: memref<1x128xf32, #tpu.memory_space<vmem>>, %arg6: memref<2x128xf32, #tpu.memory_space<vmem>>) attributes {dimension_semantics = [#tpu.dimension_semantics<parallel>], iteration_bounds = array<i64: 1>, scalar_prefetch = 0 : i64, scratch_operands = 0 : i64, tpu.core_type = #tpu.core_type<tc>, window_params = [{transform_indices = @transform_0, window_bounds = array<i64: 2, 16, 21>}, {pipeline_mode = #tpu.pipeline_mode<synchronous>, transform_indices = @transform_1, window_bounds = array<i64: 64, 64>}, {pipeline_mode = #tpu.pipeline_mode<synchronous>, transform_indices = @transform_2, window_bounds = array<i64: 1, 64>}, {pipeline_mode = #tpu.pipeline_mode<synchronous>, transform_indices = @transform_3, window_bounds = array<i64: 192, 128>}, {pipeline_mode = #tpu.pipeline_mode<synchronous>, transform_indices = @transform_4, window_bounds = array<i64: 1, 128>}, {transform_indices = @transform_5, window_bounds = array<i64: 2, 128>}]} {
    %0 = tpu.iota {dimensions = array<i32: 1>} : vector<2x16x1xi32>
    %1 = vector.shape_cast %0 : vector<2x16x1xi32> to vector<32x1xi32>
    %c0_i32 = arith.constant 0 : i32
    %2 = vector.broadcast %c0_i32 : i32 to vector<32x1xi32>
    %3 = arith.cmpi eq, %1, %2 : vector<32x1xi32>
    %c15_i32 = arith.constant 15 : i32
    %4 = vector.broadcast %c15_i32 : i32 to vector<32x1xi32>
    %5 = arith.cmpi eq, %1, %4 : vector<32x1xi32>
    %c0 = arith.constant 0 : index
    %c0_0 = arith.constant 0 : index
    %c0_1 = arith.constant 0 : index
    %6 = vector.load %arg1[%c0, %c0_0, %c0_1] : memref<2x16x21xbf16, #tpu.memory_space<vmem>>, vector<2x16x21xbf16>
    %7 = arith.extf %6 : vector<2x16x21xbf16> to vector<2x16x21xf32>
    %8 = vector.shape_cast %7 : vector<2x16x21xf32> to vector<32x21xf32>
    %c1_i32 = arith.constant 1 : i32
    %9 = tpu.dynamic_rotate %8 by %c1_i32 dim 0 : vector<32x21xf32>, i32 -> vector<32x21xf32>
    %cst = arith.constant 0.000000e+00 : f32
    %10 = vector.shape_cast %3 : vector<32x1xi1> to vector<32x1xi1>
    %11 = vector.broadcast %10 : vector<32x1xi1> to vector<32x21xi1>
    %12 = vector.broadcast %cst : f32 to vector<32x21xf32>
    %13 = arith.select %11, %12, %9 : vector<32x21xi1>, vector<32x21xf32>
    %c31_i32 = arith.constant 31 : i32
    %14 = tpu.dynamic_rotate %8 by %c31_i32 dim 0 : vector<32x21xf32>, i32 -> vector<32x21xf32>
    %cst_2 = arith.constant 0.000000e+00 : f32
    %15 = vector.shape_cast %5 : vector<32x1xi1> to vector<32x1xi1>
    %16 = vector.broadcast %15 : vector<32x1xi1> to vector<32x21xi1>
    %17 = vector.broadcast %cst_2 : f32 to vector<32x21xf32>
    %18 = arith.select %16, %17, %14 : vector<32x21xi1>, vector<32x21xf32>
    %cst_3 = arith.constant 0.000000e+00 : f32
    %19 = vector.broadcast %cst_3 : f32 to vector<32x1xf32>
    %20 = tpu.concatenate %13, %8, %18, %19 in 1 : vector<32x21xf32>, vector<32x21xf32>, vector<32x21xf32>, vector<32x1xf32> -> vector<32x64xf32>
    %21 = arith.truncf %20 : vector<32x64xf32> to vector<32x64xbf16>
    %c0_4 = arith.constant 0 : index
    %c0_5 = arith.constant 0 : index
    %22 = vector.load %arg2[%c0_4, %c0_5] : memref<64x64xbf16, #tpu.memory_space<vmem>>, vector<64x64xbf16>
    %cst_6 = arith.constant dense<0.000000e+00> : vector<32x64xf32>
    %23 = tpu.matmul %21, %22, %cst_6 {dimension_numbers = #tpu.dot_dimension_numbers<[1], [0], [0], [1], [0, 0, 1, 1], [], []>} : vector<32x64xbf16>, vector<64x64xbf16>, vector<32x64xf32> -> vector<32x64xf32>
    %c0_7 = arith.constant 0 : index
    %c0_8 = arith.constant 0 : index
    %24 = vector.load %arg3[%c0_7, %c0_8] : memref<1x64xf32, #tpu.memory_space<vmem>>, vector<1x64xf32>
    %25 = vector.broadcast %24 : vector<1x64xf32> to vector<32x64xf32>
    %26 = arith.addf %23, %25 : vector<32x64xf32>
    %cst_9 = arith.constant 0.000000e+00 : f32
    %27 = vector.broadcast %cst_9 : f32 to vector<32x64xf32>
    %28 = arith.maximumf %26, %27 : vector<32x64xf32>
    %c1_i32_10 = arith.constant 1 : i32
    %29 = tpu.dynamic_rotate %28 by %c1_i32_10 dim 0 : vector<32x64xf32>, i32 -> vector<32x64xf32>
    %cst_11 = arith.constant 0.000000e+00 : f32
    %30 = vector.shape_cast %3 : vector<32x1xi1> to vector<32x1xi1>
    %31 = vector.broadcast %30 : vector<32x1xi1> to vector<32x64xi1>
    %32 = vector.broadcast %cst_11 : f32 to vector<32x64xf32>
    %33 = arith.select %31, %32, %29 : vector<32x64xi1>, vector<32x64xf32>
    %c31_i32_12 = arith.constant 31 : i32
    %34 = tpu.dynamic_rotate %28 by %c31_i32_12 dim 0 : vector<32x64xf32>, i32 -> vector<32x64xf32>
    %cst_13 = arith.constant 0.000000e+00 : f32
    %35 = vector.shape_cast %5 : vector<32x1xi1> to vector<32x1xi1>
    %36 = vector.broadcast %35 : vector<32x1xi1> to vector<32x64xi1>
    %37 = vector.broadcast %cst_13 : f32 to vector<32x64xf32>
    %38 = arith.select %36, %37, %34 : vector<32x64xi1>, vector<32x64xf32>
    %39 = tpu.concatenate %33, %28, %38 in 1 : vector<32x64xf32>, vector<32x64xf32>, vector<32x64xf32> -> vector<32x192xf32>
    %40 = arith.truncf %39 : vector<32x192xf32> to vector<32x192xbf16>
    %c0_14 = arith.constant 0 : index
    %c0_15 = arith.constant 0 : index
    %41 = vector.load %arg4[%c0_14, %c0_15] : memref<192x128xbf16, #tpu.memory_space<vmem>>, vector<192x128xbf16>
    %cst_16 = arith.constant dense<0.000000e+00> : vector<32x128xf32>
    %42 = tpu.matmul %40, %41, %cst_16 {dimension_numbers = #tpu.dot_dimension_numbers<[1], [0], [0], [1], [0, 0, 1, 1], [], []>} : vector<32x192xbf16>, vector<192x128xbf16>, vector<32x128xf32> -> vector<32x128xf32>
    %c0_17 = arith.constant 0 : index
    %c0_18 = arith.constant 0 : index
    %43 = vector.load %arg5[%c0_17, %c0_18] : memref<1x128xf32, #tpu.memory_space<vmem>>, vector<1x128xf32>
    %44 = vector.broadcast %43 : vector<1x128xf32> to vector<32x128xf32>
    %45 = arith.addf %42, %44 : vector<32x128xf32>
    %cst_19 = arith.constant 0.000000e+00 : f32
    %46 = vector.broadcast %cst_19 : f32 to vector<32x128xf32>
    %47 = arith.maximumf %45, %46 : vector<32x128xf32>
    %48 = vector.shape_cast %47 : vector<32x128xf32> to vector<2x16x128xf32>
    %cst_20 = arith.constant dense<0xFF800000> : vector<2x128xf32>
    %49 = vector.multi_reduction <maximumf>, %48, %cst_20 [1] : vector<2x16x128xf32> to vector<2x128xf32>
    %c0_21 = arith.constant 0 : index
    %c0_22 = arith.constant 0 : index
    %50 = vector.load %arg6[%c0_21, %c0_22] : memref<2x128xf32, #tpu.memory_space<vmem>>, vector<2x128xf32>
    tpu.vector_store %arg6[%c0_21, %c0_22], %49 {strides = array<i32>} : memref<2x128xf32, #tpu.memory_space<vmem>>, vector<2x128xf32>,
    return
  }
  func.func @transform_0(%arg0: i32) -> (i32, i32, i32) {
    %c0_i32 = arith.constant 0 : i32
    %c0_i32_0 = arith.constant 0 : i32
    %c0_i32_1 = arith.constant 0 : i32
    return %arg0, %c0_i32, %c0_i32_0 : i32, i32, i32
  }
  func.func @transform_1(%arg0: i32) -> (i32, i32) {
    %c0_i32 = arith.constant 0 : i32
    %c0_i32_0 = arith.constant 0 : i32
    %c0_i32_1 = arith.constant 0 : i32
    return %c0_i32, %c0_i32_0 : i32, i32
  }
  func.func @transform_2(%arg0: i32) -> (i32, i32) {
    %c0_i32 = arith.constant 0 : i32
    %c0_i32_0 = arith.constant 0 : i32
    %c0_i32_1 = arith.constant 0 : i32
    return %c0_i32, %c0_i32_0 : i32, i32
  }
  func.func @transform_3(%arg0: i32) -> (i32, i32) {
    %c0_i32 = arith.constant 0 : i32
    %c0_i32_0 = arith.constant 0 : i32
    %c0_i32_1 = arith.constant 0 : i32
    return %c0_i32, %c0_i32_0 : i32, i32
  }
  func.func @transform_4(%arg0: i32) -> (i32, i32) {
    %c0_i32 = arith.constant 0 : i32
    %c0_i32_0 = arith.constant 0 : i32
    %c0_i32_1 = arith.constant 0 : i32
    return %c0_i32, %c0_i32_0 : i32, i32
  }
  func.func @transform_5(%arg0: i32) -> (i32, i32) {
    %c0_i32 = arith.constant 0 : i32
    %c0_i32_0 = arith.constant 0 : i32
    return %arg0, %c0_i32 : i32, i32
  }
}

</mosaic_0001>

<bundles_post_ra>
// kernel: tpu_custom_call.1
= control target key start
LH: loop header
LB: loop body
LE: loop exit
PB: predicated region body
PF: predicated region fallthrough
CT: control target
= control target key end

     0   :  { %10 = vsyncpa [#allocation3], 0  ;;  %s892_s0 = inlined_call_operand.hbm [shape: bf16[2,16,21], index: 0, kind: input, shape index: {}]   ;;  %s893_s1 = inlined_call_operand.hbm [shape: bf16[64,64], index: 1, kind: input, shape index: {}]   ;;  %s894_s2 = inlined_call_operand.vmem [shape: f32[1,64], index: 2, kind: input, shape index: {}]   ;;  %s895_s3 = inlined_call_operand.hbm [shape: bf16[192,128], index: 3, kind: input, shape index: {}]   ;;  %s896_s4 = inlined_call_operand.vmem [shape: f32[1,128], index: 4, kind: input, shape index: {}]   ;;  %s897_s5 = inlined_call_operand.hbm [shape: f32[2,128], index: 5, kind: output, shape index: {}]  }
   0x1   :  { %11 = vsyncpa [#allocation6], 0 }
   0x2   :  { %12 = vsyncpa [#allocation4], 0  ;;  %s704_s18 = smov [#allocation5]   ;;  %s705_s20 = smov [#allocation2]  }
   0x3   :  { %s30_s19 = sshll.u32 %s704_s18, 4  ;;  %s18_s21 = sshll.u32 %s705_s20, 4  ;;  %s31_s19 = int_to_ptr.vmem [resolvable:$true] %s30_s19  ;;  %s743_s21 = int_to_ptr.vmem [resolvable:$true] %s18_s21 }
   0x4   :  { %s610_s24 = scalar_lea.hbm %s893_s1, 512 }
   0x5   :  { %p611_p0 = scmp.ne.s32.totalorder %s893_s1, %s610_s24  ;;  %p614_p1 = scmp.lt.u32.totalorder %s610_s24, %s893_s1 }
   0x7   :  { %p616_p2 = pnand %p614_p1, %p611_p0 }
   0x9   :  { %619 = shalt.err (!%p616_p2)
}
   0xa   :  { %s620_s29 = scalar_lea.vmem %s31_s19, 512  ;;  %p625_p4 = scmp.lt.s32.totalorder %s31_s19, %s31_s19 }
   0xb   :  { %p621_p3 = scmp.ne.s32.totalorder %s31_s19, %s620_s29  ;;  %p626_p5 = scmp.lt.s32.totalorder %s620_s29, %s620_s29 }
   0xd   :  { %p627_p6 = por %p626_p5, %p625_p4 }
   0xf   :  { %p628_p7 = pnand %p627_p6, %p621_p3 }
  0x11   :  { %631 = shalt.err (!%p628_p7)
}
  0x12   :  { %s706_s30 = smov 64   ;;  %s707_s6 = smov 4  }
  0x13   :  { %36 = dma.hbm_to_vmem [thread:$0]  %s893_s1, 512, %s31_s19, [#allocation6], %s706_s30, %s706_s30, %s707_s6  }
  0x14   :  { %s632_s11 = scalar_lea.hbm %s892_s0, 256 }
  0x15   :  { %p633_p8 = scmp.ne.s32.totalorder %s892_s0, %s632_s11  ;;  %p636_p9 = scmp.lt.u32.totalorder %s632_s11, %s892_s0 }
  0x17   :  { %p638_p10 = pnand %p636_p9, %p633_p8 }
  0x19   :  { %641 = shalt.err (!%p638_p10)
}
  0x1a   :  { %s642_s16 = scalar_lea.vmem %s743_s21, 256  ;;  %p647_p12 = scmp.lt.s32.totalorder %s743_s21, %s743_s21 }
  0x1b   :  { %p643_p11 = scmp.ne.s32.totalorder %s743_s21, %s642_s16  ;;  %p648_p13 = scmp.lt.s32.totalorder %s642_s16, %s642_s16 }
  0x1d   :  { %p649_p0 = por %p648_p13, %p647_p12 }
  0x1f   :  { %p650_p1 = pnand %p649_p0, %p643_p11 }
  0x21   :  { %653 = shalt.err (!%p650_p1)
}
  0x22   :  { %24 = dma.hbm_to_vmem [thread:$0]  %s892_s0, 256, %s743_s21, [#allocation3], %s706_s30, %s706_s30, %s707_s6  }
  0x23   :  { %s708_s18 = smov [#allocation7]   ;;  %s654_s23 = scalar_lea.hbm %s895_s3, 1536 }
  0x24   :  { %s44_s19 = sshll.u32 %s708_s18, 4  ;;  %p655_p2 = scmp.ne.s32.totalorder %s895_s3, %s654_s23  ;;  %s45_s19 = int_to_ptr.vmem [resolvable:$true] %s44_s19 }
  0x25   :  { %p658_p3 = scmp.lt.u32.totalorder %s654_s23, %s895_s3 }
  0x27   :  { %p660_p4 = pnand %p658_p3, %p655_p2 }
  0x29   :  { %663 = shalt.err (!%p660_p4)
}
  0x2a   :  { %s664_s28 = scalar_lea.vmem %s45_s19, 1536  ;;  %p669_p6 = scmp.lt.s32.totalorder %s45_s19, %s45_s19 }
  0x2b   :  { %p665_p5 = scmp.ne.s32.totalorder %s45_s19, %s664_s28  ;;  %p670_p7 = scmp.lt.s32.totalorder %s664_s28, %s664_s28 }
  0x2d   :  { %p671_p8 = por %p670_p7, %p669_p6 }
  0x2f   :  { %p672_p9 = pnand %p671_p8, %p665_p5 }
  0x31   :  { %675 = shalt.err (!%p672_p9)
}
  0x32   :  { %50 = dma.hbm_to_vmem [thread:$0]  %s895_s3, 1536, %s45_s19, [#allocation6], %s706_s30, %s706_s30, %s707_s6  }
  0x33   :  { %698 = dma.done.wait [#allocation3], 256  }
  0x34   :  { %699 = vsyncadd [#allocation3], 4294967040 }
  0x35   :  { %700 = dma.done.wait [#allocation6], 2048  }
  0x36   :  { %701 = vsyncadd [#allocation6], 4294965248  ;;  %v63_v0 = vlaneseq  ;;  %v529_v3 = vld [vmem:[#allocation2] sm:$0xff]   ;;  %v536_v4 = vld [vmem:[#allocation2 + $0x8] sm:$0xff]   ;;  %s709_s3 = smov 21   ;;  %s710_s29 = smov 42  }
  0x37   :  { %v530_v5 = vunpack.c.l.bf16 %v529_v3  ;;  %v531_v6 = vunpack.c.h.bf16 %v529_v3  ;;  %v534_v7 = vunpack.c.l.bf16 %v536_v4  ;;  %v535_v8 = vunpack.c.h.bf16 %v536_v4  ;;  %v594_v9 = vld [vmem:[#allocation5] sm:$0xff]   ;;  %v595_v10 = vld [vmem:[#allocation5 + $0x8] sm:$0xff]   ;;  %v596_v18 = vld [vmem:[#allocation5 + $0x10] sm:$0xff]  }
  0x38   :  { %v795_v1 = vshrl.u32 %v63_v0, 7  ;;  %543 = vmatprep.subr.bf16.mxu0 %v594_v9  ;;  %v597_v33 = vld [vmem:[#allocation5 + $0x18] sm:$0xff]   ;;  %vm144_vm4 = vcmask 171008   ;;  %vm149_vm5 = vcmask 343040   ;;  %vm154_vm6 = vcmask 515072   ;;  %v598_v63 = vld [vmem:[#allocation7] sm:$0xff]  }
  0x39   :  { %v79_v11 = vrot.slane %v531_v6, 7  ;;  %v564_v12 = vpack.i.bf16 %v531_v6, %v530_v5  ;;  %v78_v13 = vrot.slane %v530_v5, 7  ;;  %v95_v14 = vrot.slane %v530_v5, 1  ;;  %544 = vmatpush3.bf16.msra.mxu0 %v594_v9  ;;  %v599_v3 = vld [vmem:[#allocation7 + $0x8] sm:$0xff]   ;;  %v600_v4 = vld [vmem:[#allocation7 + $0x10] sm:$0xff]   ;;  %v601_v5 = vld [vmem:[#allocation7 + $0x18] sm:$0xff]  }
  0x3a   :  { %v798_v2 = vadd.s32 8, %v795_v1  ;;  %vm82_vm0 = vcmp.lt.s32.totalorder %v795_v1, 1  ;;  %vm99_vm1 = vcmp.lt.s32.totalorder %v795_v1, 7  ;;  %v96_v15 = vrot.slane %v531_v6, 1  ;;  %545 = vmatprep.subr.bf16.mxu0 %v595_v10  ;;  %v602_v6 = vld [vmem:[#allocation7 + $0x20] sm:$0xff]   ;;  %v605_v9 = vld [vmem:[#allocation7 + $0x38] sm:$0xff]  }
  0x3b   :  { %v97_v16 = vrot.slane %v534_v7, 1  ;;  %v98_v17 = vrot.slane %v535_v8, 1  ;;  %565 = vrot.lane.b32.xlu0 %v564_v12, %s709_s3  ;;  %v569_v19 = vpack.i.bf16 %v535_v8, %v534_v7  ;;  %v80_v20 = vrot.slane %v534_v7, 7  ;;  %v603_v7 = vld [vmem:[#allocation7 + $0x28] sm:$0xff]   ;;  %v608_v12 = vld [vmem:[#allocation7 + $0x50] sm:$0xff]  }
  0x3c   :  { %vm69_vm2 = vcmp.eq.s32.totalorder %v798_v2, 15  ;;  %v81_v21 = vrot.slane %v535_v8, 7  ;;  %v85_v22 = vsel %vm82_vm0, %v78_v13, %v79_v11  ;;  %v102_v24 = vsel %vm99_vm1, %v95_v14, %v96_v15  ;;  %v604_v8 = vld [vmem:[#allocation7 + $0x30] sm:$0xff]  }
  0x3d   :  { %v101_v23 = vsel %vm99_vm1, %v96_v15, %v97_v16  ;;  %v100_v25 = vsel %vm99_vm1, %v97_v16, %v98_v17  ;;  %v103_v26 = vsel %vm99_vm1, %v98_v17, %v95_v14  ;;  %v84_v30 = vsel %vm82_vm0, %v79_v11, %v80_v20  ;;  %546 = vmatpush3.bf16.msra.mxu0 %v595_v10  ;;  %v606_v10 = vld [vmem:[#allocation7 + $0x40] sm:$0xff]   ;;  %v607_v11 = vld [vmem:[#allocation7 + $0x48] sm:$0xff]   ;;  %v506_v14 = vld [vmem:[%s894_s2] ss:$0 sm:$0xff] }
  0x3e   :  { %v109_v27 = vsel %vm69_vm2, 0.0, %v101_v23  ;;  %v111_v28 = vsel %vm69_vm2, 0.0, %v103_v26  ;;  %v83_v29 = vsel %vm82_vm0, %v80_v20, %v81_v21  ;;  %v86_v32 = vsel %vm82_vm0, %v81_v21, %v78_v13  ;;  %547 = vmatprep.subr.bf16.mxu0 %v596_v18  ;;  %v609_v13 = vld [vmem:[#allocation7 + $0x58] sm:$0xff]  }
  0x3f   :  { %v574_v31 = vpack.i.bf16 %v109_v27, %v102_v24  ;;  %570 = vrot.lane.b32.xlu0 %v569_v19, %s709_s3  ;;  %v579_v34 = vpack.i.bf16 %v111_v28, %v100_v25  ;;  %vm66_vm3 = vcmp.eq.s32.totalorder %v795_v1, 0  ;;  %vm200_vm7 = vcmask 523264  }
  0x40   :  { %v91_v38 = vsel %vm66_vm3, 0.0, %v86_v32  ;;  %v93_v47 = vsel %vm66_vm3, 0.0, %v84_v30  ;;  %v711_v0 = vmov 0   ;;  %vm486_vm8 = vcmask 1041409  }
  0x41   :  { %575 = vrot.lane.b32.xlu1 %v574_v31, %s710_s29  ;;  %548 = vmatpush3.bf16.msra.mxu0 %v596_v18 }
  0x42   :  { %549 = vmatprep.subr.bf16.mxu0 %v597_v33  ;;  %417 = vmatprep.subr.bf16.mxu1 %v711_v0 }
  0x43   :  { %418 = vmatpush1.bf16.msra.mxu1 %v598_v63 }
  0x44   :  { %419 = vmatprep.subr.bf16.mxu1 %v711_v0 }
  0x45   :  { %580 = vrot.lane.b32.xlu1 %v579_v34, %s710_s29  ;;  %550 = vmatpush3.bf16.msra.mxu0 %v597_v33 }
  0x47   :  { %420 = vmatpush1.bf16.msra.mxu1 %v599_v3 }
  0x48   :  { %421 = vmatprep.subr.bf16.mxu1 %v711_v0 }
  0x4b   :  { %422 = vmatpush1.bf16.msra.mxu1 %v600_v4 }
  0x4c   :  { %423 = vmatprep.subr.bf16.mxu1 %v711_v0 }
  0x4f   :  { %424 = vmatpush1.bf16.msra.mxu1 %v601_v5 }
  0x50   :  { %425 = vmatprep.subr.bf16.mxu1 %v711_v0 }
  0x53   :  { %426 = vmatpush1.bf16.msra.mxu1 %v602_v6 }
  0x54   :  { %427 = vmatprep.subr.bf16.mxu1 %v711_v0 }
  0x57   :  { %428 = vmatpush1.bf16.msra.mxu1 %v603_v7 }
  0x58   :  { %429 = vmatprep.subr.bf16.mxu1 %v711_v0 }
  0x5b   :  { %430 = vmatpush1.bf16.msra.mxu1 %v604_v8 }
  0x5c   :  { %431 = vmatprep.subr.bf16.mxu1 %v711_v0 }
  0x5f   :  { %432 = vmatpush1.bf16.msra.mxu1 %v605_v9 }
  0x60   :  { %433 = vmatprep.subr.bf16.mxu1 %v711_v0 }
  0x63   :  { %434 = vmatpush1.bf16.msra.mxu1 %v606_v10 }
  0x64   :  { %435 = vmatprep.subr.bf16.mxu1 %v711_v0 }
  0x67   :  { %436 = vmatpush1.bf16.msra.mxu1 %v607_v11 }
  0x68   :  { %437 = vmatprep.subr.bf16.mxu1 %v711_v0 }
  0x6b   :  { %438 = vmatpush1.bf16.msra.mxu1 %v608_v12 }
  0x6c   :  { %439 = vmatprep.subr.bf16.mxu1 %v711_v0 }
  0x6f   :  { %440 = vmatpush1.bf16.msra.mxu1 %v609_v13 }
  0xad   :  { %v566_v35 = vpop.permute.xlu0 %565 }
  0xae   :  { %v568_v36 = vunpack.i.h.bf16 %v566_v35  ;;  %v567_v37 = vunpack.i.l.bf16 %v566_v35 }
  0xb0   :  { %v145_v43 = vsel %vm144_vm4, %v91_v38, %v567_v37  ;;  %v146_v44 = vsel %vm144_vm4, %v85_v22, %v568_v36 }
  0xb1   :  { %v571_v39 = vpop.permute.xlu0 %570 }
  0xb2   :  { %v573_v41 = vunpack.i.h.bf16 %v571_v39  ;;  %v572_v42 = vunpack.i.l.bf16 %v571_v39 }
  0xb3   :  { %v576_v40 = vpop.permute.xlu1 %575 }
  0xb4   :  { %v578_v45 = vunpack.i.h.bf16 %v576_v40  ;;  %v577_v46 = vunpack.i.l.bf16 %v576_v40  ;;  %v148_v50 = vsel %vm144_vm4, %v83_v29, %v573_v41  ;;  %v147_v51 = vsel %vm144_vm4, %v93_v47, %v572_v42 }
  0xb6   :  { %v150_v48 = vsel %vm149_vm5, %v145_v43, %v577_v46  ;;  %v151_v49 = vsel %vm149_vm5, %v146_v44, %v578_v45 }
  0xb7   :  { %v581_v52 = vpop.permute.xlu1 %580  ;;  %v155_v53 = vsel %vm154_vm6, %v150_v48, 0.0  ;;  %v156_v54 = vsel %vm154_vm6, %v151_v49, 0.0 }
  0xb8   :  { %v583_v55 = vunpack.i.h.bf16 %v581_v52  ;;  %v582_v56 = vunpack.i.l.bf16 %v581_v52  ;;  %v159_v57 = vpack.c.bf16 %v156_v54, %v155_v53 }
  0xba   :  { %v153_v58 = vsel %vm149_vm5, %v148_v50, %v583_v55  ;;  %v152_v59 = vsel %vm149_vm5, %v147_v51, %v582_v56  ;;  %551 = vmatprep.mubr.msk.bf16.mxu0 %vm200_vm7, %v159_v57 }
  0xbb   :  { %v157_v60 = vsel %vm154_vm6, %v152_v59, 0.0  ;;  %v158_v61 = vsel %vm154_vm6, %v153_v58, 0.0 }
  0xbc   :  { %v160_v62 = vpack.c.bf16 %v158_v61, %v157_v60 }
  0xbe   :  { %552 = vmatmul.mubr.msk.bf16.vlgmr.msra.gmra.mrb[0].mxu0 %vm200_vm7, %v160_v62  ;;  %v513_v62 = vld [vmem:[%s896_s4] ss:$0 sm:$0xff]  ;;  %s712_s4 = smov [#allocation8]  }
  0xbf   :  { %s496_s8 = sshll.u32 %s712_s4, 4  ;;  %s497_s8 = int_to_ptr.vmem [resolvable:$true] %s496_s8 }
  0xc0   :  { %s676_s9 = scalar_lea.vmem %s497_s8, 32  ;;  %p681_p11 = scmp.lt.s32.totalorder %s497_s8, %s497_s8 }
  0xc1   :  { %p677_p10 = scmp.ne.s32.totalorder %s497_s8, %s676_s9  ;;  %p682_p12 = scmp.lt.s32.totalorder %s676_s9, %s676_s9 }
  0xc3   :  { %p683_p13 = por %p682_p12, %p681_p11 }
  0xc5   :  { %p684_p0 = pnand %p683_p13, %p677_p10 }
 0x191   :  { %v553_v15 = vpop.f32.mrb[0].mxu0 }
 0x192   :  { %v250_v16 = vadd.f32 %v553_v15, %v506_v14  ;;  %v241_v17 = vpop.f32.mrb[1].mxu0 }
 0x193   :  { %v242_v18 = vadd.f32 %v506_v14, %v241_v17  ;;  %v554_v19 = vpop.f32.mrb[2].mxu0 }
 0x194   :  { %v258_v20 = vmax.f32 %v250_v16, 0.0  ;;  %v253_v21 = vadd.f32 %v554_v19, %v506_v14  ;;  %v244_v22 = vpop.f32.mrb[3].mxu0 }
 0x195   :  { %v256_v23 = vmax.f32 %v242_v18, 0.0  ;;  %v245_v24 = vadd.f32 %v506_v14, %v244_v22 }
 0x196   :  { %v259_v25 = vmax.f32 %v253_v21, 0.0  ;;  %v262_v26 = vrot.slane %v258_v20, 7  ;;  %v274_v30 = vrot.slane %v258_v20, 1 }
 0x197   :  { %v260_v27 = vrot.slane %v256_v23, 7  ;;  %v272_v28 = vrot.slane %v256_v23, 1  ;;  %v257_v29 = vmax.f32 %v245_v24, 0.0 }
 0x198   :  { %v263_v31 = vrot.slane %v259_v25, 7  ;;  %v275_v32 = vrot.slane %v259_v25, 1  ;;  %v589_v33 = vpack.i.bf16 %v259_v25, %v258_v20 }
 0x199   :  { %v261_v34 = vrot.slane %v257_v29, 7  ;;  %v273_v35 = vrot.slane %v257_v29, 1  ;;  %v584_v36 = vpack.i.bf16 %v257_v29, %v256_v23 }
 0x19a   :  { %590 = vrot.lane.b32.xlu1 %v589_v33, %s706_s30  ;;  %v267_v37 = vsel %vm82_vm0, %v263_v31, %v260_v27  ;;  %v276_v38 = vsel %vm99_vm1, %v274_v30, %v275_v32  ;;  %v279_v39 = vsel %vm99_vm1, %v275_v32, %v272_v28  ;;  %v264_v40 = vsel %vm82_vm0, %v262_v26, %v263_v31 }
 0x19b   :  { %585 = vrot.lane.b32.xlu0 %v584_v36, %s706_s30  ;;  %v277_v41 = vsel %vm99_vm1, %v273_v35, %v274_v30  ;;  %v278_v42 = vsel %vm99_vm1, %v272_v28, %v273_v35  ;;  %v266_v43 = vsel %vm82_vm0, %v260_v27, %v261_v34  ;;  %v283_v45 = vsel %vm69_vm2, 0.0, %v279_v39 }
 0x19c   :  { %v281_v44 = vsel %vm69_vm2, 0.0, %v277_v41  ;;  %v265_v46 = vsel %vm82_vm0, %v261_v34, %v262_v26  ;;  %v307_v48 = vpack.c.bf16 %v283_v45, %v276_v38  ;;  %v268_v2 = vsel %vm66_vm3, 0.0, %v267_v37 }
 0x19d   :  { %v305_v47 = vpack.c.bf16 %v281_v44, %v278_v42  ;;  %v270_v55 = vsel %vm66_vm3, 0.0, %v265_v46 }
 0x19f   :  { %526 = vmatprep.mubr.msk.bf16.mxu1 %vm200_vm7, %v305_v47 }
 0x20c   :  { %v591_v49 = vpop.permute.xlu1 %590 }
 0x20d   :  { %v593_v50 = vunpack.i.h.bf16 %v591_v49  ;;  %v592_v51 = vunpack.i.l.bf16 %v591_v49  ;;  %v586_v52 = vpop.permute.xlu0 %585 }
 0x20e   :  { %v588_v53 = vunpack.i.h.bf16 %v586_v52  ;;  %v587_v54 = vunpack.i.l.bf16 %v586_v52 }
 0x20f   :  { %v302_v56 = vsel %vm200_vm7, %v270_v55, %v592_v51  ;;  %v303_v57 = vsel %vm200_vm7, %v264_v40, %v593_v50 }
 0x210   :  { %v300_v58 = vsel %vm200_vm7, %v268_v2, %v587_v54  ;;  %v301_v59 = vsel %vm200_vm7, %v266_v43, %v588_v53  ;;  %v306_v60 = vpack.c.bf16 %v303_v57, %v302_v56 }
 0x211   :  { %v304_v61 = vpack.c.bf16 %v301_v59, %v300_v58 }
 0x213   :  { %450 = vmatmul.mubr.bf16.vlgmr.msra.gmra.mrb[0].mxu1 %v304_v61 }
 0x214   :  { %527 = vmatprep.mubr.msk.bf16.mxu1 %vm200_vm7, %v307_v48 }
 0x21b   :  { %458 = vmatmul.mubr.bf16.gmra.mrb[4].mxu1 %v306_v60 }
 0x2e6   :  { %v451_v1 = vpop.f32.mrb[0].mxu1 }
 0x2e7   :  { %v452_v63 = vadd.f32 %v513_v62, %v451_v1  ;;  %v453_v0 = vpop.f32.mrb[1].mxu1 }
 0x2e8   :  { %v454_v3 = vpop.f32.mrb[2].mxu1 }
 0x2e9   :  { %v455_v4 = vadd.f32 %v513_v62, %v454_v3  ;;  %v456_v5 = vpop.f32.mrb[3].mxu1  ;;  %v466_v6 = vmax.f32 %v452_v63, 0.0 }
 0x2eb   :  { %v467_v7 = vmax.f32 %v455_v4, 0.0 }
 0x2ed   :  { %v470_v8 = vmax.f32 %v466_v6, %v467_v7 }
 0x2ee   :  { %v459_v9 = vpop.f32.mrb[4].mxu1 }
 0x2ef   :  { %v471_v10 = vrot.slane %v470_v8, 4  ;;  %v460_v11 = vadd.f32 %v513_v62, %v459_v9  ;;  %v461_v12 = vpop.f32.mrb[5].mxu1 }
 0x2f0   :  { %v462_v13 = vpop.f32.mrb[6].mxu1 }
 0x2f1   :  { %v472_v14 = vmax.f32 %v470_v8, %v471_v10  ;;  %v463_v15 = vadd.f32 %v513_v62, %v462_v13  ;;  %v464_v16 = vpop.f32.mrb[7].mxu1  ;;  %v468_v17 = vmax.f32 %v460_v11, 0.0 }
 0x2f3   :  { %v469_v18 = vmax.f32 %v463_v15, 0.0  ;;  %v473_v19 = vrot.slane %v472_v14, 2 }
 0x2f5   :  { %v477_v20 = vmax.f32 %v468_v17, %v469_v18  ;;  %v474_v22 = vmax.f32 %v472_v14, %v473_v19 }
 0x2f7   :  { %v478_v21 = vrot.slane %v477_v20, 4  ;;  %v475_v25 = vrot.slane %v474_v22, 1 }
 0x2f9   :  { %v479_v23 = vmax.f32 %v477_v20, %v478_v21  ;;  %v476_v28 = vmax.f32 %v474_v22, %v475_v25 }
 0x2fb   :  { %v480_v24 = vrot.slane %v479_v23, 2 }
 0x2fd   :  { %v481_v26 = vmax.f32 %v479_v23, %v480_v24 }
 0x2ff   :  { %v482_v27 = vrot.slane %v481_v26, 1 }
 0x301   :  { %v483_v29 = vmax.f32 %v481_v26, %v482_v27 }
 0x303   :  { %v487_v30 = vsel %vm486_vm8, %v483_v29, %v476_v28 }
 0x304   :  { %489 = vst [vmem:[#allocation8] sm:$0x3] %v487_v30 }
 0x305   :  { %687 = shalt.err (!%p684_p0)
}
 0x306   :  { %s688_s12 = scalar_lea.hbm %s897_s5, 32 }
 0x307   :  { %p689_p1 = scmp.ne.s32.totalorder %s897_s5, %s688_s12  ;;  %p692_p2 = scmp.lt.u32.totalorder %s688_s12, %s897_s5 }
 0x309   :  { %p694_p3 = pnand %p692_p2, %p689_p1 }
 0x30b   :  { %697 = shalt.err (!%p694_p3)
}
 0x30c   :  { %499 = dma.vmem_to_hbm [thread:$0]  %s497_s8, 32, %s897_s5, [#allocation4]  }
 0x30d   :  { %702 = dma.done.wait [#allocation4], 32  }
 0x30e   :  { %703 = vsyncadd [#allocation4], 4294967264 }
 0x30f   :  { %503 = vsyncpa [#allocation3], 1 }
 0x310   :  { %504 = vsyncpa [#allocation6], 1 }
 0x311   :  { %505 = vsyncpa [#allocation4], 1 }

</bundles_post_ra>
